<compile_context>
chip_gen: v6e
topology: v6e:2x2x1
jax: 0.10.0
libtpu: 0.0.40
codegen_flags: <defaults>
</compile_context>

<pallas_src>
import functools

import jax
import jax.numpy as jnp
from jax.experimental import pallas as pl
from jax.experimental.pallas import tpu as pltpu


def _round_up(x: int, m: int) -> int:
    return ((x + m - 1) // m) * m


def _vmem_capacity_bytes() -> int:
    try:
        return int(pltpu.get_tpu_info().vmem_capacity_bytes)
    except Exception:
        return 64 * 1024 * 1024  # conservative default (v7x per-TC VMEM)


def _pick_batch_tile(b_pad: int, step: int, max_tile: int = 128) -> int:
    """Largest multiple-of-`step` divisor of b_pad that is <= max_tile,
    preferring choices that leave >= 2 batch tiles (v7x megacore sharding)."""
    divisors = [d for d in range(step, b_pad + 1, step) if b_pad % d == 0]
    if not divisors:
        return b_pad
    multi = [d for d in divisors if d <= max_tile and b_pad // d >= 2]
    if multi:
        return multi[-1]
    within = [d for d in divisors if d <= max_tile]
    if within:
        return within[-1]
    return divisors[0]


# ---------------------------------------------------------------------------
# Path A: (S, B, E) stream (bf16 by default) -> grid reduction over seq tiles.
# ---------------------------------------------------------------------------
def _reduce_forward(embedded, w_t, b2d, inv_s, *, tb, ts, vmem_cap):
    """embedded: (S_pad, B_pad, E_pad) stream dtype; w_t: (E_pad, O_pad) f32;
    b2d: (1, O_pad) f32.  Returns (B_pad, O_pad) f32."""
    s_pad, b_pad, e_pad = embedded.shape
    o_pad = w_t.shape[1]
    n_b, n_s = b_pad // tb, s_pad // ts

    def kernel(emb_ref, w_ref, b_ref, out_ref, acc_ref):
        s = pl.program_id(1)

        @pl.when(s == 0)
        def _init():
            acc_ref[...] = jnp.zeros_like(acc_ref)

        # f32 accumulation of the per-tile partial mean (bf16 stream upcast on read).
        acc_ref[...] += jnp.sum(emb_ref[...].astype(jnp.float32), axis=0) * inv_s

        @pl.when(s == pl.num_programs(1) - 1)
        def _finalize():
            out_ref[...] = (
                jnp.dot(acc_ref[...], w_ref[...], preferred_element_type=jnp.float32)
                + b_ref[...]
            )

    itemsize = jnp.dtype(embedded.dtype).itemsize
    emb_tile = ts * tb * e_pad * itemsize
    # Double-buffered emb stream + (conservatively double-counted) residents.
    resident = (2 * e_pad * o_pad + 2 * o_pad + 2 * tb * o_pad + tb * e_pad) * 4
    needed = 2 * emb_tile + resident + (6 << 20)
    cap_limit = max(int(vmem_cap * 0.8), 32 << 20)  # never request the full VMEM
    vmem_limit = int(min(max(needed, 32 << 20), cap_limit))

    grid_spec = pltpu.PrefetchScalarGridSpec(
        num_scalar_prefetch=0,
        grid=(n_b, n_s),
        in_specs=[
            # (S, B, E) embedded stream, tiled over (seq, batch); E full-extent.
            pl.BlockSpec((ts, tb, e_pad), lambda b, s: (s, b, 0)),
            # Weight / bias: resident (constant block index -> DMA'd once).
            # TODO(synk): pipeline_mode=pl.Buffered(1) here would drop the second
            # VMEM copy of W/bias; skipped to keep compile risk at zero.
            pl.BlockSpec((e_pad, o_pad), lambda b, s: (0, 0)),
            pl.BlockSpec((1, o_pad), lambda b, s: (0, 0)),
        ],
        out_specs=pl.BlockSpec((tb, o_pad), lambda b, s: (b, 0)),
        scratch_shapes=[pltpu.VMEM((tb, e_pad), jnp.float32)],
    )

    return pl.pallas_call(
        kernel,
        out_shape=jax.ShapeDtypeStruct((b_pad, o_pad), jnp.float32),
        grid_spec=grid_spec,
        compiler_params=pltpu.CompilerParams(
            dimension_semantics=("parallel", "arbitrary"),
            vmem_limit_bytes=vmem_limit,
        ),
    )(embedded, w_t, b2d)


# ---------------------------------------------------------------------------
# Path B: embedding gather fused into the kernel (scalar-prefetch ids + manual
# double-buffered row DMAs from the HBM-resident table).
# ---------------------------------------------------------------------------
def _fused_forward(ids_flat, table, w_t, b2d, inv_s, *, seq_len, b_pad, tb, vmem_cap):
    """ids_flat: (S * B_pad,) int32, row-major (s, b); table: (V, E_pad) stays in HBM;
    w_t: (E_pad, O_pad) f32; b2d: (1, O_pad) f32.  Returns (B_pad, O_pad) f32."""
    _, e_pad = table.shape
    o_pad = w_t.shape[1]
    n_b = b_pad // tb
    row_dtype = table.dtype
    itemsize = jnp.dtype(row_dtype).itemsize

    def kernel(ids_ref, table_ref, w_ref, b_ref, out_ref, rowbuf, acc_ref, sem):
        bi = pl.program_id(0)
        col0 = bi * tb

        def fetch(s, slot):
            # Issue TB row DMAs (table[token] -> staging row j) for seq step s.
            @pl.loop(0, tb)
            def _(j):
                tok = ids_ref[s * b_pad + col0 + j]
                pltpu.make_async_copy(
                    table_ref.at[pl.ds(tok, 1), :],
                    rowbuf.at[slot, pl.ds(j, 1), :],
                    sem.at[slot, j],
                ).start()

            return None

        def wait_slot(slot):
            @pl.loop(0, tb)
            def _(j):
                pltpu.make_async_copy(
                    table_ref.at[pl.ds(0, 1), :],  # dummy src; wait is keyed on dst/sem
                    rowbuf.at[slot, pl.ds(j, 1), :],
                    sem.at[slot, j],
                ).wait()

            return None

        acc_ref[...] = jnp.zeros_like(acc_ref)
        fetch(0, 0)

        @pl.loop(0, seq_len)
        def _(s):
            slot = s % 2
            wait_slot(slot)

            @pl.when(s + 1 < seq_len)
            def _prefetch():
                fetch(s + 1, 1 - slot)

            acc_ref[...] += rowbuf[slot].astype(jnp.float32) * inv_s

        out_ref[...] = (
            jnp.dot(acc_ref[...], w_ref[...], preferred_element_type=jnp.float32)
            + b_ref[...]
        )

    needed = (
        2 * tb * e_pad * itemsize   # double-buffered row staging
        + tb * e_pad * 4            # f32 accumulator
        + 2 * e_pad * o_pad * 4     # weight (pipeline-buffered)
        + 2 * o_pad * 4             # bias
        + 2 * tb * o_pad * 4        # output block
        + (8 << 20)                 # headroom for Mosaic internals
    )
    cap_limit = max(int(vmem_cap * 0.8), 32 << 20)
    vmem_limit = int(min(max(needed, 32 << 20), cap_limit))

    grid_spec = pltpu.PrefetchScalarGridSpec(
        num_scalar_prefetch=1,                      # token ids -> SMEM
        grid=(n_b,),
        in_specs=[
            pl.BlockSpec(memory_space=pl.ANY),      # embedding table stays in HBM
            pl.BlockSpec((e_pad, o_pad), lambda b, ids: (0, 0)),
            pl.BlockSpec((1, o_pad), lambda b, ids: (0, 0)),
        ],
        out_specs=pl.BlockSpec((tb, o_pad), lambda b, ids: (b, 0)),
        scratch_shapes=[
            pltpu.VMEM((2, tb, e_pad), row_dtype),  # row staging, 2 slots
            pltpu.VMEM((tb, e_pad), jnp.float32),   # running mean
            pltpu.SemaphoreType.DMA((2, tb)),       # per-row DMA semaphores
        ],
    )

    return pl.pallas_call(
        kernel,
        out_shape=jax.ShapeDtypeStruct((b_pad, o_pad), jnp.float32),
        grid_spec=grid_spec,
        compiler_params=pltpu.CompilerParams(
            dimension_semantics=("parallel",),
            vmem_limit_bytes=vmem_limit,
        ),
    )(ids_flat, table, w_t, b2d)


# ---------------------------------------------------------------------------
# Full forward matching the PyTorch module.
# ---------------------------------------------------------------------------
def word_avg_model(text, embed_table, lin_weight, lin_bias, *,
                   fuse_gather=None, stream_dtype=None, tb=None, ts=None):
    """text: (S, B) int token ids; embed_table: (V, E) f32 (padding_idx row zeroed);
    lin_weight: (O, E) f32 (nn.Linear layout); lin_bias: (O,) f32.  Returns (B, O) f32."""
    S, B = text.shape
    _, E = embed_table.shape
    O = lin_weight.shape[0]

    e_pad = _round_up(E, 128)
    o_pad = _round_up(O, 128)
    vmem_cap = _vmem_capacity_bytes()
    inv_s = 1.0 / float(S)   # mean over the *true* sequence length (matches avg_pool2d)

    # Linear weight transposed + zero-padded to lane multiples (zeros are inert).
    w_t = jnp.pad(lin_weight.T.astype(jnp.float32), ((0, e_pad - E), (0, o_pad - O)))
    b2d = jnp.pad(lin_bias.astype(jnp.float32), (0, o_pad - O)).reshape(1, o_pad)

    if fuse_gather is None:
        # Fuse when a gathered row is a reasonably sized DMA (>= 512 B) and the
        # id array fits comfortably in SMEM (1-D, <= ~0.5 MiB padded).
        fuse_gather = (4 * e_pad >= 512) and (S * _round_up(B, 8) <= (1 << 17))

    if fuse_gather:
        # ---- Path B: gather fused into the kernel (no (S,B,E) HBM intermediate).
        row_dtype = stream_dtype
        if row_dtype is None:
            # bf16 rows only when they stay >= 512 B per DMA; else keep exact f32.
            row_dtype = jnp.bfloat16 if 2 * e_pad >= 512 else jnp.float32
        b_pad = _round_up(B, 8)
        table = embed_table.astype(row_dtype)
        if e_pad != E:
            table = jnp.pad(table, ((0, 0), (0, e_pad - E)))
        ids = text.astype(jnp.int32)
        if b_pad != B:
            ids = jnp.pad(ids, ((0, 0), (0, b_pad - B)))   # padded cols -> token 0; rows sliced off
        ids_flat = ids.reshape(-1)
        if tb is None:
            tb = _pick_batch_tile(b_pad, 8)
        out_pad = _fused_forward(ids_flat, table, w_t, b2d, inv_s,
                                 seq_len=S, b_pad=b_pad, tb=tb, vmem_cap=vmem_cap)
    else:
        # ---- Path A: XLA gather (bf16 stream by default) + grid-reduction kernel.
        stream = jnp.bfloat16 if stream_dtype is None else stream_dtype
        sub = 16 if jnp.dtype(stream) == jnp.dtype(jnp.bfloat16) else 8
        b_pad = _round_up(B, sub)
        table = embed_table.astype(stream)
        if e_pad != E:
            table = jnp.pad(table, ((0, 0), (0, e_pad - E)))
        embedded = jnp.take(table, text, axis=0)             # (S, B, e_pad) -- no permute
        if b_pad != B:
            embedded = jnp.pad(embedded, ((0, 0), (0, b_pad - B), (0, 0)))
        if tb is None:
            tb = _pick_batch_tile(b_pad, sub)
        if ts is None:
            budget = (8 << 20) if vmem_cap >= (100 << 20) else (4 << 20)
            ts_budget = max(1, budget // (tb * e_pad * jnp.dtype(stream).itemsize))
            n_s = -(-S // min(S, ts_budget))                  # cdiv
            ts = -(-S // n_s)                                 # balanced seq tile (avoids ts=1 cliff)
        s_pad = _round_up(S, ts)
        if s_pad != S:
            embedded = jnp.pad(embedded, ((0, s_pad - S), (0, 0), (0, 0)))  # zero rows: inert
        out_pad = _reduce_forward(embedded, w_t, b2d, inv_s,
                                  tb=tb, ts=ts, vmem_cap=vmem_cap)

    return out_pad[:B, :O]


if __name__ == "__main__":
    # Small deterministic setup consistent with the module's __init__.
    vocab_size = 50
    embedding_size = 32
    output_size = 8
    pad_idx = 0
    seq_len = 16
    batch = 4

    key = jax.random.PRNGKey(0)
    k_emb, k_w, k_b, k_txt = jax.random.split(key, 4)

    embed_table = jax.random.normal(k_emb, (vocab_size, embedding_size), dtype=jnp.float32)
    embed_table = embed_table.at[pad_idx].set(0.0)   # nn.Embedding padding_idx row is zero

    lin_weight = jax.random.normal(k_w, (output_size, embedding_size), dtype=jnp.float32) * 0.1
    lin_bias = jax.random.normal(k_b, (output_size,), dtype=jnp.float32) * 0.1

    text = jax.random.randint(k_txt, (seq_len, batch), 0, vocab_size, dtype=jnp.int32)

    # Pure-JAX reference of the original PyTorch forward.
    ref_emb = jnp.transpose(jnp.take(embed_table, text, axis=0), (1, 0, 2))  # (B, S, E)
    ref_out = jnp.mean(ref_emb, axis=1) @ lin_weight.T + lin_bias

    # Path B: fused-gather kernel (default auto path here), f32 rows -> near-exact.
    fused_fn = jax.jit(functools.partial(word_avg_model, fuse_gather=True))
    out_fused = jax.block_until_ready(fused_fn(text, embed_table, lin_weight, lin_bias))
    assert out_fused.shape == (batch, output_size)
    assert jnp.allclose(out_fused, ref_out, atol=1e-4, rtol=1e-4), float(
        jnp.max(jnp.abs(out_fused - ref_out)))

    # Path A: XLA gather + bf16 stream, ts=4 so the multi-step seq accumulation
    # (init / accumulate / finalize across the reduction grid axis) is exercised.
    reduce_fn = jax.jit(functools.partial(word_avg_model, fuse_gather=False, ts=4))
    out_red = jax.block_until_ready(reduce_fn(text, embed_table, lin_weight, lin_bias))
    assert out_red.shape == (batch, output_size)
    assert jnp.allclose(out_red, ref_out, atol=3e-2, rtol=3e-2), float(
        jnp.max(jnp.abs(out_red - ref_out)))

    print("KERNEL_OK")
</pallas_src>

<mosaic_0001>
module attributes {stable_mosaic.version = 11 : i64} {
  func.func @kernel(%arg0: i32, %arg1: memref<128xi32, #tpu.memory_space<smem>>, %arg2: memref<50x128xf32, #tpu.memory_space<any>>, %arg3: memref<128x128xf32, #tpu.memory_space<vmem>>, %arg4: memref<1x128xf32, #tpu.memory_space<vmem>>, %arg5: memref<8x128xf32, #tpu.memory_space<vmem>>, %arg6: memref<2x8x128xf32, #tpu.memory_space<vmem>>, %arg7: memref<8x128xf32, #tpu.memory_space<vmem>>, %arg8: memref<2x8x!tpu.dma_semaphore, #tpu.memory_space<semaphore_mem>>) attributes {dimension_semantics = [#tpu.dimension_semantics<parallel>], iteration_bounds = array<i64: 1>, scalar_prefetch = 1 : i64, scratch_operands = 3 : i64, tpu.core_type = #tpu.core_type<tc>, window_params = [{}, {pipeline_mode = #tpu.pipeline_mode<synchronous>, transform_indices = @transform_1, window_bounds = array<i64: 128, 128>}, {pipeline_mode = #tpu.pipeline_mode<synchronous>, transform_indices = @transform_2, window_bounds = array<i64: 1, 128>}, {transform_indices = @transform_3, window_bounds = array<i64: 8, 128>}]} {
    %c8_i32 = arith.constant 8 : i32
    %0 = arith.muli %arg0, %c8_i32 : i32
    %cst = arith.constant 0.000000e+00 : f32
    %1 = vector.broadcast %cst : f32 to vector<8x128xf32>
    %c0 = arith.constant 0 : index
    %c0_0 = arith.constant 0 : index
    %2 = vector.load %arg7[%c0, %c0_0] : memref<8x128xf32, #tpu.memory_space<vmem>>, vector<8x128xf32>
    tpu.vector_store %arg7[%c0, %c0_0], %1 {strides = array<i32>} : memref<8x128xf32, #tpu.memory_space<vmem>>, vector<8x128xf32>,
    %c0_i32 = arith.constant 0 : i32
    %c8_i32_1 = arith.constant 8 : i32
    %3 = arith.addi %c0_i32, %c8_i32_1 : i32
    %c1_i32 = arith.constant 1 : i32
    scf.for %arg9 = %c0_i32 to %3 step %c1_i32  : i32 {
      %c1_i32_15 = arith.constant 1 : i32
      %12 = arith.muli %arg9, %c1_i32_15 : i32
      %c0_i32_16 = arith.constant 0 : i32
      %13 = arith.addi %c0_i32_16, %12 : i32
      %c0_i32_17 = arith.constant 0 : i32
      %14 = arith.addi %c0_i32_17, %0 : i32
      %15 = arith.addi %14, %13 : i32
      %16 = arith.index_cast %15 : i32 to index
      %17 = memref.load %arg1[%16] : memref<128xi32, #tpu.memory_space<smem>>
      %c0_i32_18 = arith.constant 0 : i32
      %c0_i32_19 = arith.constant 0 : i32
      %c0_i32_20 = arith.constant 0 : i32
      %18 = tpu.memref_slice %arg2[%17, %c0_i32_20] : memref<50x128xf32, #tpu.memory_space<any>> -> memref<1x128xf32, #tpu.memory_space<any>>
      %c0_i32_21 = arith.constant 0 : i32
      %19 = tpu.memref_slice %arg6[%c0_i32_18, %13, %c0_i32_21] : memref<2x8x128xf32, #tpu.memory_space<vmem>> -> memref<1x1x128xf32, #tpu.memory_space<vmem>>
      %20 = tpu.memref_squeeze %19 : memref<1x1x128xf32, #tpu.memory_space<vmem>> -> memref<1x128xf32, #tpu.memory_space<vmem>>
      %21 = tpu.memref_slice %arg8[%c0_i32_19, %13] : memref<2x8x!tpu.dma_semaphore, #tpu.memory_space<semaphore_mem>> -> memref<1x1x!tpu.dma_semaphore, #tpu.memory_space<semaphore_mem>>
      %22 = tpu.memref_squeeze %21 : memref<1x1x!tpu.dma_semaphore, #tpu.memory_space<semaphore_mem>> -> memref<!tpu.dma_semaphore, #tpu.memory_space<semaphore_mem>>
      tpu.enqueue_dma source(%18 : memref<1x128xf32, #tpu.memory_space<any>>) target(%20 : memref<1x128xf32, #tpu.memory_space<vmem>>) target_semaphore(%22 : memref<!tpu.dma_semaphore, #tpu.memory_space<semaphore_mem>>)
    }
    %c8_i32_2 = arith.constant 8 : i32
    %c0_i32_3 = arith.constant 0 : i32
    %c16_i32 = arith.constant 16 : i32
    %4 = arith.addi %c0_i32_3, %c16_i32 : i32
    %c1_i32_4 = arith.constant 1 : i32
    scf.for %arg9 = %c0_i32_3 to %4 step %c1_i32_4  : i32 {
      %c1_i32_15 = arith.constant 1 : i32
      %12 = arith.muli %arg9, %c1_i32_15 : i32
      %c0_i32_16 = arith.constant 0 : i32
      %13 = arith.addi %c0_i32_16, %12 : i32
      %c2_i32 = arith.constant 2 : i32
      %c0_i32_17 = arith.constant 0 : i32
      %14 = arith.cmpi eq, %c2_i32, %c0_i32_17 : i32
      %c1_i32_18 = arith.constant 1 : i32
      %15 = arith.select %14, %c1_i32_18, %c2_i32 : i32
      %16 = arith.remsi %13, %15 : i32
      %c0_i32_19 = arith.constant 0 : i32
      %17 = arith.cmpi ne, %16, %c0_i32_19 : i32
      %c0_i32_20 = arith.constant 0 : i32
      %18 = arith.cmpi slt, %16, %c0_i32_20 : i32
      %c0_i32_21 = arith.constant 0 : i32
      %19 = arith.cmpi slt, %15, %c0_i32_21 : i32
      %20 = arith.xori %18, %19 : i1
      %21 = arith.andi %20, %17 : i1
      %22 = arith.addi %16, %15 : i32
      %23 = arith.select %21, %22, %16 : i32
      %c0_i32_22 = arith.constant 0 : i32
      %c8_i32_23 = arith.constant 8 : i32
      %24 = arith.addi %c0_i32_22, %c8_i32_23 : i32
      %c1_i32_24 = arith.constant 1 : i32
      scf.for %arg10 = %c0_i32_22 to %24 step %c1_i32_24  : i32 {
        %c1_i32_36 = arith.constant 1 : i32
        %37 = arith.muli %arg10, %c1_i32_36 : i32
        %c0_i32_37 = arith.constant 0 : i32
        %38 = arith.addi %c0_i32_37, %37 : i32
        %c0_i32_38 = arith.constant 0 : i32
        %c0_i32_39 = arith.constant 0 : i32
        %39 = tpu.memref_slice %arg2[%c0_i32_38, %c0_i32_39] : memref<50x128xf32, #tpu.memory_space<any>> -> memref<1x128xf32, #tpu.memory_space<any>>
        %c0_i32_40 = arith.constant 0 : i32
        %40 = tpu.memref_slice %arg6[%23, %38, %c0_i32_40] : memref<2x8x128xf32, #tpu.memory_space<vmem>> -> memref<1x1x128xf32, #tpu.memory_space<vmem>>
        %41 = tpu.memref_squeeze %40 : memref<1x1x128xf32, #tpu.memory_space<vmem>> -> memref<1x128xf32, #tpu.memory_space<vmem>>
        %42 = tpu.memref_slice %arg8[%23, %38] : memref<2x8x!tpu.dma_semaphore, #tpu.memory_space<semaphore_mem>> -> memref<1x1x!tpu.dma_semaphore, #tpu.memory_space<semaphore_mem>>
        %43 = tpu.memref_squeeze %42 : memref<1x1x!tpu.dma_semaphore, #tpu.memory_space<semaphore_mem>> -> memref<!tpu.dma_semaphore, #tpu.memory_space<semaphore_mem>>
        tpu.wait_dma2 semaphore(%43 : memref<!tpu.dma_semaphore, #tpu.memory_space<semaphore_mem>>) src(%39 : memref<1x128xf32, #tpu.memory_space<any>>) dst(%41 : memref<1x128xf32, #tpu.memory_space<vmem>>)
      }
      %c8_i32_25 = arith.constant 8 : i32
      %c1_i32_26 = arith.constant 1 : i32
      %25 = arith.addi %13, %c1_i32_26 : i32
      %c16_i32_27 = arith.constant 16 : i32
      %26 = arith.cmpi slt, %25, %c16_i32_27 : i32
      %27 = arith.extui %26 : i1 to i32
      %c0_i32_28 = arith.constant 0 : i32
      %28 = arith.cmpi ne, %27, %c0_i32_28 : i32
      scf.if %28 {
        %c1_i32_36 = arith.constant 1 : i32
        %37 = arith.addi %13, %c1_i32_36 : i32
        %c1_i32_37 = arith.constant 1 : i32
        %38 = arith.subi %c1_i32_37, %23 : i32
        %c0_i32_38 = arith.constant 0 : i32
        %c8_i32_39 = arith.constant 8 : i32
        %39 = arith.addi %c0_i32_38, %c8_i32_39 : i32
        %c1_i32_40 = arith.constant 1 : i32
        scf.for %arg10 = %c0_i32_38 to %39 step %c1_i32_40  : i32 {
          %c1_i32_42 = arith.constant 1 : i32
          %40 = arith.muli %arg10, %c1_i32_42 : i32
          %c0_i32_43 = arith.constant 0 : i32
          %41 = arith.addi %c0_i32_43, %40 : i32
          %c8_i32_44 = arith.constant 8 : i32
          %42 = arith.muli %37, %c8_i32_44 : i32
          %43 = arith.addi %42, %0 : i32
          %44 = arith.addi %43, %41 : i32
          %45 = arith.index_cast %44 : i32 to index
          %46 = memref.load %arg1[%45] : memref<128xi32, #tpu.memory_space<smem>>
          %c0_i32_45 = arith.constant 0 : i32
          %47 = tpu.memref_slice %arg2[%46, %c0_i32_45] : memref<50x128xf32, #tpu.memory_space<any>> -> memref<1x128xf32, #tpu.memory_space<any>>
          %c0_i32_46 = arith.constant 0 : i32
          %48 = tpu.memref_slice %arg6[%38, %41, %c0_i32_46] : memref<2x8x128xf32, #tpu.memory_space<vmem>> -> memref<1x1x128xf32, #tpu.memory_space<vmem>>
          %49 = tpu.memref_squeeze %48 : memref<1x1x128xf32, #tpu.memory_space<vmem>> -> memref<1x128xf32, #tpu.memory_space<vmem>>
          %50 = tpu.memref_slice %arg8[%38, %41] : memref<2x8x!tpu.dma_semaphore, #tpu.memory_space<semaphore_mem>> -> memref<1x1x!tpu.dma_semaphore, #tpu.memory_space<semaphore_mem>>
          %51 = tpu.memref_squeeze %50 : memref<1x1x!tpu.dma_semaphore, #tpu.memory_space<semaphore_mem>> -> memref<!tpu.dma_semaphore, #tpu.memory_space<semaphore_mem>>
          tpu.enqueue_dma source(%47 : memref<1x128xf32, #tpu.memory_space<any>>) target(%49 : memref<1x128xf32, #tpu.memory_space<vmem>>) target_semaphore(%51 : memref<!tpu.dma_semaphore, #tpu.memory_space<semaphore_mem>>)
        }
        %c8_i32_41 = arith.constant 8 : i32
      } else {
      }
      %c0_29 = arith.constant 0 : index
      %c0_30 = arith.constant 0 : index
      %29 = vector.load %arg7[%c0_29, %c0_30] : memref<8x128xf32, #tpu.memory_space<vmem>>, vector<8x128xf32>
      %30 = arith.index_cast %23 : i32 to index
      %c0_31 = arith.constant 0 : index
      %c0_32 = arith.constant 0 : index
      %31 = vector.load %arg6[%30, %c0_31, %c0_32] : memref<2x8x128xf32, #tpu.memory_space<vmem>>, vector<1x8x128xf32>
      %32 = vector.shape_cast %31 : vector<1x8x128xf32> to vector<8x128xf32>
      %cst_33 = arith.constant 6.250000e-02 : f32
      %33 = vector.broadcast %cst_33 : f32 to vector<8x128xf32>
      %34 = arith.mulf %32, %33 : vector<8x128xf32>
      %35 = arith.addf %29, %34 : vector<8x128xf32>
      %c0_34 = arith.constant 0 : index
      %c0_35 = arith.constant 0 : index
      %36 = vector.load %arg7[%c0_34, %c0_35] : memref<8x128xf32, #tpu.memory_space<vmem>>, vector<8x128xf32>
      tpu.vector_store %arg7[%c0_34, %c0_35], %35 {strides = array<i32>} : memref<8x128xf32, #tpu.memory_space<vmem>>, vector<8x128xf32>,
    }
    %c16_i32_5 = arith.constant 16 : i32
    %c0_6 = arith.constant 0 : index
    %c0_7 = arith.constant 0 : index
    %5 = vector.load %arg7[%c0_6, %c0_7] : memref<8x128xf32, #tpu.memory_space<vmem>>, vector<8x128xf32>
    %c0_8 = arith.constant 0 : index
    %c0_9 = arith.constant 0 : index
    %6 = vector.load %arg3[%c0_8, %c0_9] : memref<128x128xf32, #tpu.memory_space<vmem>>, vector<128x128xf32>
    %cst_10 = arith.constant dense<0.000000e+00> : vector<8x128xf32>
    %7 = tpu.matmul %5, %6, %cst_10 {dimension_numbers = #tpu.dot_dimension_numbers<[1], [0], [0], [1], [0, 0, 1, 1], [], []>} : vector<8x128xf32>, vector<128x128xf32>, vector<8x128xf32> -> vector<8x128xf32>
    %c0_11 = arith.constant 0 : index
    %c0_12 = arith.constant 0 : index
    %8 = vector.load %arg4[%c0_11, %c0_12] : memref<1x128xf32, #tpu.memory_space<vmem>>, vector<1x128xf32>
    %9 = vector.broadcast %8 : vector<1x128xf32> to vector<8x128xf32>
    %10 = arith.addf %7, %9 : vector<8x128xf32>
    %c0_13 = arith.constant 0 : index
    %c0_14 = arith.constant 0 : index
    %11 = vector.load %arg5[%c0_13, %c0_14] : memref<8x128xf32, #tpu.memory_space<vmem>>, vector<8x128xf32>
    tpu.vector_store %arg5[%c0_13, %c0_14], %10 {strides = array<i32>} : memref<8x128xf32, #tpu.memory_space<vmem>>, vector<8x128xf32>,
    return
  }
  func.func @transform_1(%arg0: i32, %arg1: memref<128xi32, #tpu.memory_space<smem>>) -> (i32, i32) {
    %c0_i32 = arith.constant 0 : i32
    %c0_i32_0 = arith.constant 0 : i32
    %c0_i32_1 = arith.constant 0 : i32
    return %c0_i32, %c0_i32_0 : i32, i32
  }
  func.func @transform_2(%arg0: i32, %arg1: memref<128xi32, #tpu.memory_space<smem>>) -> (i32, i32) {
    %c0_i32 = arith.constant 0 : i32
    %c0_i32_0 = arith.constant 0 : i32
    %c0_i32_1 = arith.constant 0 : i32
    return %c0_i32, %c0_i32_0 : i32, i32
  }
  func.func @transform_3(%arg0: i32, %arg1: memref<128xi32, #tpu.memory_space<smem>>) -> (i32, i32) {
    %c0_i32 = arith.constant 0 : i32
    %c0_i32_0 = arith.constant 0 : i32
    return %arg0, %c0_i32 : i32, i32
  }
}

</mosaic_0001>

<bundles_post_ra>
// kernel: word_avg_model.1
= control target key start
LH: loop header
LB: loop body
LE: loop exit
PB: predicated region body
PF: predicated region fallthrough
CT: control target
= control target key end

     0   :  { %s750_s0 = inlined_call_operand.vmem [shape: s32[128], index: 0, kind: input, shape index: {}]   ;;  %s751_s1 = inlined_call_operand.vmem [shape: f32[50,128], index: 1, kind: input, shape index: {}]   ;;  %s752_s2 = inlined_call_operand.vmem [shape: f32[128,128], index: 2, kind: input, shape index: {}]   ;;  %s753_s3 = inlined_call_operand.vmem [shape: f32[1,128], index: 3, kind: input, shape index: {}]   ;;  %s754_s4 = inlined_call_operand.vmem [shape: f32[8,128], index: 4, kind: output, shape index: {}]  }
   0x1   :  { %s9_s17 = sshll.u32 %s750_s0, 4  ;;  %s10_s17 = int_to_ptr.vmem [resolvable:$true] %s9_s17 }
   0x2   :  { %s561_s18 = scalar_lea.vmem %s10_s17, 16  ;;  %p566_p1 = scmp.lt.s32.totalorder %s10_s17, %s10_s17 }
   0x3   :  { %p562_p0 = scmp.ne.s32.totalorder %s10_s17, %s561_s18  ;;  %p567_p2 = scmp.lt.s32.totalorder %s561_s18, %s561_s18 }
   0x5   :  { %p568_p3 = por %p567_p2, %p566_p1 }
   0x7   :  { %p569_p4 = pnand %p568_p3, %p562_p0 }
   0x9   :  { %572 = shalt.err (!%p569_p4)  }
   0xa   :  { %s609_s19 = smov [#allocation6]  }
   0xb   :  { %12 = dma.vmem_to_smem %s10_s17, 16, %s609_s19, [#allocation5] }
   0xc   :  { %589 = dma.done.wait [#allocation5], 16 }
   0xd   :  { %590 = vsyncadd [#allocation5], 4294967280 }
   0xe   :  { %14 = sfence }
   0xf   :  { %v610_v0 = vmov 0.0   ;;  %s593_s20 = smov 0  }
  0x10   :  { %20 = vst [vmem:[#allocation3] sm:$0xff] %v610_v0 }
  0x11 LB: > { %s28_s0 = sld [smem:[#allocation6 + %s595_s20]]  ;;  %s30_s24 = scalar_lea.vmem [#allocation2], %s595_s20  ;;  %s595_s20 = sphi %s593_s20, %s26_s20  }
  0x12   : > { %s31_s25 = scalar_lea.sflag [#allocation4], %s595_s20 }
  0x17   : > { %s29_s23 = scalar_lea.vmem %s751_s1, %s28_s0 }
  0x18   : > { %v50_v1 = vld [vmem:[%s29_s23] sm:$0x1] }
  0x19   : > { %51 = vst [vmem:[%s30_s24] sm:$0x1] %v50_v1 }
  0x1a   : > { %77 = vsyncadd %s31_s25, 16  ;;  %s26_s20 = sadd.s32 1, %s595_s20  }
  0x1b   : > { %p23_p5 = scmp.ge.s32.totalorder %s26_s20, 8  }
  0x1c   :  { %s644_s26 = smov (%p23_p5), 0  }
  0x1d   :  { %25 = sbr.rel (!%p23_p5) target bundleno = 17 (0x11), region = 163 }
  0x22 LB: > { %p84_p6 = scmp.lt.s32.totalorder %s599_s26, 0  ;;  %s85_s27 = ssub.s32 0, %s599_s26  ;;  %s599_s26 = sphi %s644_s26, %s756_s26  }
  0x23   : > { %s447_s28 = smin.u32 %s599_s26, %s85_s27  ;;  %s601_s6 = smov 0  }
  0x24   : > { %s87_s29 = sand.u32 1, %s447_s28  }
  0x25   : > { %s88_s30 = ssub.s32 0, %s87_s29 }
  0x26   : > { %s758_s30 = smov (!%p84_p6, %s88_s30), %s87_s29 }
  0x27   : > { %p449_p7 = scmp.lt.s32.totalorder %s758_s30, 0  ;;  %s94_s5 = sadd.s32 2, %s758_s30 }
  0x29   : > { %s760_s5 = smov (!%p449_p7, %s94_s5), %s758_s30 }
  0x2a LB: >> { %s450_s7 = sshll.u32 %s760_s5, 3  ;;  %s603_s6 = sphi %s601_s6, %s101_s6  }
  0x2b   : >> { %s103_s8 = sadd.s32 %s603_s6, %s450_s7 }
  0x2c   : >> { %s104_s9 = scalar_lea.sflag [#allocation4], %s103_s8 }
  0x2d   : >> { %591 = dma.done.wait %s104_s9, 16 }
  0x2e   : >> { %592 = vsyncadd %s104_s9, 4294967280  ;;  %s101_s6 = sadd.s32 1, %s603_s6  }
  0x2f   : >> { %p98_p8 = scmp.ge.s32.totalorder %s101_s6, 8  }
  0x30   : > { %s108_s10 = sadd.s32 (%p98_p8), 1, %s599_s26  }
  0x31   : > { %100 = sbr.rel (!%p98_p8) target bundleno = 42 (0x2a), region = 174  ;;  %p660_p9 = scmp.ge.s32.totalorder (%p98_p8), %s108_s10, 16 }
  0x36   : > { %112 = sbr.rel (%p660_p9) target bundleno = 79 (0x4f), region = 64  ;;  %s113_s12 = ssub.s32 (!%p660_p9), 1, %s760_s5 }
  0x37   : > { %s605_s13 = smov (!%p660_p9), 0  }
  0x3b LB: >> { %s472_s14 = sshll.u32 %s599_s26, 3  ;;  %s453_s17 = sshll.u32 %s113_s12, 3  ;;  %s607_s13 = sphi %s605_s13, %s119_s13  }
  0x3c   : >> { %s473_s15 = sadd.s32 8, %s472_s14  ;;  %s126_s19 = sadd.s32 %s607_s13, %s453_s17 }
  0x3d   : >> { %s122_s16 = sadd.s32 %s607_s13, %s473_s15  ;;  %s127_s22 = scalar_lea.vmem [#allocation2], %s126_s19 }
  0x3e   : >> { %s123_s18 = sld [smem:[#allocation6 + %s122_s16]]  ;;  %s128_s23 = scalar_lea.sflag [#allocation4], %s126_s19 }
  0x44   : >> { %s124_s21 = scalar_lea.vmem %s751_s1, %s123_s18 }
  0x45   : >> { %v147_v2 = vld [vmem:[%s124_s21] sm:$0x1] }
  0x46   : >> { %148 = vst [vmem:[%s127_s22] sm:$0x1] %v147_v2 }
  0x47   : >> { %174 = vsyncadd %s128_s23, 16  ;;  %s119_s13 = sadd.s32 1, %s607_s13  }
  0x48   : >> { %p116_p10 = scmp.ge.s32.totalorder %s119_s13, 8  }
  0x4a   : > { %118 = sbr.rel (!%p116_p10) target bundleno = 59 (0x3b), region = 185 }
  0x4f PF: > { %v175_v3 = vld [vmem:[#allocation3] sm:$0xff]  ;;  %s177_s24 = scalar_lea.vmem [#allocation2], %s450_s7  ;;  %s756_s26 = smov %s108_s10  ;;  %491 = vmatprep.subr.mxu0 (%p660_p9), %v610_v0  ;;  %v198_v7 = vld [vmem:[%s752_s2 + $0x78] sm:$0xff] (%p660_p9)  ;;  %vm611_vm0 = vmmov (%p660_p9), 0   ;;  %v196_v9 = vld [vmem:[%s752_s2 + $0x68] sm:$0xff] (%p660_p9) }
  0x50   : > { %v178_v4 = vld [vmem:[%s177_s24] sm:$0xff]  ;;  %v197_v8 = vld [vmem:[%s752_s2 + $0x70] sm:$0xff] (%p660_p9)  ;;  %492 = vmatpush3.msra.mxu0 (%p660_p9), %v198_v7  ;;  %523 = vmatprep.mubr.msk.f32.mxu0 (%p660_p9), %vm611_vm0, %v610_v0  ;;  %v194_v11 = vld [vmem:[%s752_s2 + $0x58] sm:$0xff] (%p660_p9) }
  0x51   : > { %v179_v5 = vmul.f32 0.0625, %v178_v4  ;;  %82 = sbr.rel (!%p660_p9) target bundleno = 34 (0x22), region = 196  ;;  %493 = vmatprep.subr.mxu0 (%p660_p9), %v610_v0  ;;  %v195_v10 = vld [vmem:[%s752_s2 + $0x60] sm:$0xff] (%p660_p9)  ;;  %v193_v12 = vld [vmem:[%s752_s2 + $0x50] sm:$0xff] (%p660_p9)  ;;  %v192_v13 = vld [vmem:[%s752_s2 + $0x48] sm:$0xff] (%p660_p9) }
  0x52   :  { %494 = vmatpush3.msra.mxu0 (%p660_p9), %v197_v8  ;;  %v191_v14 = vld [vmem:[%s752_s2 + $0x40] sm:$0xff] (%p660_p9)  ;;  %v190_v15 = vld [vmem:[%s752_s2 + $0x38] sm:$0xff] (%p660_p9)  ;;  %v189_v16 = vld [vmem:[%s752_s2 + $0x30] sm:$0xff] (%p660_p9) }
  0x53   : > { %v180_v6 = vadd.f32 %v179_v5, %v175_v3  ;;  %495 = vmatprep.subr.mxu0 (%p660_p9), %v610_v0  ;;  %v188_v17 = vld [vmem:[%s752_s2 + $0x28] sm:$0xff] (%p660_p9)  ;;  %v187_v18 = vld [vmem:[%s752_s2 + $0x20] sm:$0xff] (%p660_p9)  ;;  %v186_v19 = vld [vmem:[%s752_s2 + $0x18] sm:$0xff] (%p660_p9) }
  0x54   :  { %496 = vmatpush3.msra.mxu0 (%p660_p9), %v196_v9  ;;  %v185_v20 = vld [vmem:[%s752_s2 + $0x10] sm:$0xff] (%p660_p9)  ;;  %v184_v21 = vld [vmem:[%s752_s2 + $0x8] sm:$0xff] (%p660_p9)  ;;  %v183_v22 = vld [vmem:[%s752_s2] sm:$0xff] (%p660_p9) }
  0x55   : > { %181 = vst [vmem:[#allocation3] sm:$0xff] %v180_v6  ;;  %497 = vmatprep.subr.mxu0 (%p660_p9), %v610_v0  ;;  %v455_v24 = vld [vmem:[%s753_s3] ss:$0 sm:$0xff] (%p660_p9) }
  0x56   :  { %498 = vmatpush3.msra.mxu0 %v195_v10 }
  0x57   :  { %499 = vmatprep.subr.mxu0 %v610_v0 }
  0x58   :  { %500 = vmatpush3.msra.mxu0 %v194_v11 }
  0x59   :  { %501 = vmatprep.subr.mxu0 %v610_v0 }
  0x5a   :  { %502 = vmatpush3.msra.mxu0 %v193_v12 }
  0x5b   :  { %503 = vmatprep.subr.mxu0 %v610_v0 }
  0x5c   :  { %504 = vmatpush3.msra.mxu0 %v192_v13  ;;  %v182_v23 = vld [vmem:[#allocation3] sm:$0xff] }
  0x5d   :  { %505 = vmatprep.subr.mxu0 %v610_v0 }
  0x5e   :  { %506 = vmatpush3.msra.mxu0 %v191_v14 }
  0x5f   :  { %507 = vmatprep.subr.mxu0 %v610_v0 }
  0x60   :  { %508 = vmatpush3.msra.mxu0 %v190_v15 }
  0x61   :  { %509 = vmatprep.subr.mxu0 %v610_v0 }
  0x62   :  { %510 = vmatpush3.msra.mxu0 %v189_v16 }
  0x63   :  { %511 = vmatprep.subr.mxu0 %v610_v0 }
  0x64   :  { %512 = vmatpush3.msra.mxu0 %v188_v17 }
  0x65   :  { %513 = vmatprep.subr.mxu0 %v610_v0 }
  0x66   :  { %514 = vmatpush3.msra.mxu0 %v187_v18 }
  0x67   :  { %515 = vmatprep.subr.mxu0 %v610_v0 }
  0x68   :  { %516 = vmatpush3.msra.mxu0 %v186_v19 }
  0x69   :  { %517 = vmatprep.subr.mxu0 %v610_v0 }
  0x6a   :  { %518 = vmatpush3.msra.mxu0 %v185_v20 }
  0x6b   :  { %519 = vmatprep.subr.mxu0 %v610_v0 }
  0x6c   :  { %520 = vmatpush3.msra.mxu0 %v184_v21 }
  0x6d   :  { %521 = vmatprep.subr.mxu0 %v610_v0 }
  0x6e   :  { %522 = vmatpush3.msra.mxu0 %v183_v22 }
  0x6f   :  { %524 = vmatmul.mubr.f32.vlgmr.msra.gmra.mxu0 %v182_v23 }
 0x12f   :  { %v272_v25 = vpop.f32.mrf.mxu0 }
 0x130   :  { %v273_v26 = vadd.f32 %v455_v24, %v272_v25 }
 0x131   :  { %v525_v27 = vpop.f32.mrf.mxu0 }
 0x132   :  { %276 = vst [vmem:[%s754_s4] sm:$0xff] %v273_v26 }
 0x133   :  { %281 = vsyncmov [#allocation4] }
 0x136   :  { %s282_s6 = vpop.sfrf %281 }
 0x137   :  { %p456_p11 = scmp.ne.s32.totalorder %s282_s6, 0 }
 0x139   :  { %286 = shalt.err (%p456_p11)  }
 0x13a   :  { %288 = vsyncmov [#allocation4 + $0x1] }
 0x13d   :  { %s289_s2 = vpop.sfrf %288 }
 0x13e   :  { %p457_p12 = scmp.ne.s32.totalorder %s289_s2, 0 }
 0x140   :  { %293 = shalt.err (%p457_p12)  }
 0x141   :  { %295 = vsyncmov [#allocation4 + $0x2] }
 0x144   :  { %s296_s7 = vpop.sfrf %295 }
 0x145   :  { %p458_p13 = scmp.ne.s32.totalorder %s296_s7, 0 }
 0x147   :  { %300 = shalt.err (%p458_p13)  }
 0x148   :  { %302 = vsyncmov [#allocation4 + $0x3] }
 0x14b   :  { %s303_s3 = vpop.sfrf %302 }
 0x14c   :  { %p459_p0 = scmp.ne.s32.totalorder %s303_s3, 0 }
 0x14e   :  { %307 = shalt.err (%p459_p0)  }
 0x14f   :  { %309 = vsyncmov [#allocation4 + $0x4] }
 0x152   :  { %s310_s8 = vpop.sfrf %309 }
 0x153   :  { %p460_p1 = scmp.ne.s32.totalorder %s310_s8, 0 }
 0x155   :  { %314 = shalt.err (%p460_p1)  }
 0x156   :  { %316 = vsyncmov [#allocation4 + $0x5] }
 0x159   :  { %s317_s4 = vpop.sfrf %316 }
 0x15a   :  { %p461_p2 = scmp.ne.s32.totalorder %s317_s4, 0 }
 0x15c   :  { %321 = shalt.err (%p461_p2)  }
 0x15d   :  { %323 = vsyncmov [#allocation4 + $0x6] }
 0x160   :  { %s324_s9 = vpop.sfrf %323 }
 0x161   :  { %p462_p3 = scmp.ne.s32.totalorder %s324_s9, 0 }
 0x163   :  { %328 = shalt.err (%p462_p3)  }
 0x164   :  { %330 = vsyncmov [#allocation4 + $0x7] }
 0x167   :  { %s331_s10 = vpop.sfrf %330 }
 0x168   :  { %p463_p4 = scmp.ne.s32.totalorder %s331_s10, 0 }
 0x16a   :  { %335 = shalt.err (%p463_p4)  }
 0x16b   :  { %337 = vsyncmov [#allocation4 + $0x8] }
 0x16e   :  { %s338_s11 = vpop.sfrf %337 }
 0x16f   :  { %p464_p5 = scmp.ne.s32.totalorder %s338_s11, 0 }
 0x171   :  { %342 = shalt.err (%p464_p5)  }
 0x172   :  { %344 = vsyncmov [#allocation4 + $0x9] }
 0x175   :  { %s345_s12 = vpop.sfrf %344 }
 0x176   :  { %p465_p6 = scmp.ne.s32.totalorder %s345_s12, 0 }
 0x178   :  { %349 = shalt.err (%p465_p6)  }
 0x179   :  { %351 = vsyncmov [#allocation4 + $0xa] }
 0x17c   :  { %s352_s13 = vpop.sfrf %351 }
 0x17d   :  { %p466_p7 = scmp.ne.s32.totalorder %s352_s13, 0 }
 0x17f   :  { %356 = shalt.err (%p466_p7)  }
 0x180   :  { %358 = vsyncmov [#allocation4 + $0xb] }
 0x183   :  { %s359_s14 = vpop.sfrf %358 }
 0x184   :  { %p467_p8 = scmp.ne.s32.totalorder %s359_s14, 0 }
 0x186   :  { %363 = shalt.err (%p467_p8)  }
 0x187   :  { %365 = vsyncmov [#allocation4 + $0xc] }
 0x18a   :  { %s366_s15 = vpop.sfrf %365 }
 0x18b   :  { %p468_p9 = scmp.ne.s32.totalorder %s366_s15, 0 }
 0x18d   :  { %370 = shalt.err (%p468_p9)  }
 0x18e   :  { %372 = vsyncmov [#allocation4 + $0xd] }
 0x191   :  { %s373_s16 = vpop.sfrf %372 }
 0x192   :  { %p469_p10 = scmp.ne.s32.totalorder %s373_s16, 0 }
 0x194   :  { %377 = shalt.err (%p469_p10)  }
 0x195   :  { %379 = vsyncmov [#allocation4 + $0xe] }
 0x198   :  { %s380_s17 = vpop.sfrf %379 }
 0x199   :  { %p470_p11 = scmp.ne.s32.totalorder %s380_s17, 0 }
 0x19b   :  { %384 = shalt.err (%p470_p11)  }
 0x19c   :  { %386 = vsyncmov [#allocation4 + $0xf] }
 0x19f   :  { %s387_s18 = vpop.sfrf %386 }
 0x1a0   :  { %p471_p12 = scmp.ne.s32.totalorder %s387_s18, 0 }
 0x1a2   :  { %391 = shalt.err (%p471_p12)  }

</bundles_post_ra>
